<compile_context>
chip_gen: v7x
topology: tpu7x:2x2x1
jax: 0.10.0
libtpu: 0.0.40
codegen_flags: <defaults>
</compile_context>

<pallas_src>
import jax
import jax.numpy as jnp
import numpy as np
from jax.experimental import pallas as pl
from jax.experimental.pallas import tpu as pltpu


def dirt_kernel(x_ref,        # (M, 2E)  bf16   gathered [user | item] embedding rows
                w1_ref,       # (2E, 2H) bf16   blockdiag(W1u, W1i)
                b1_ref,       # (1, 2H)  f32    [b1u | b1i]
                w2u_ref,      # (1, 2H)  f32    [w2u | 0]
                w2i_ref,      # (1, 2H)  f32    [0 | w2i]
                tail_ref,     # (1, 8)   f32    [b2u, b2i, au, ai, c, 0, 0, 0]
                selt_ref,     # (TB, M)  f32    row-group selector  (m // S == t)
                sels_ref,     # (M, S)   f32    column selector     (m %  S == s)
                out_ref):     # (TB, S)  f32    softmax probabilities
    # ---- first (block-diagonal) layer: one bf16 MXU matmul covers both heads --
    h1 = jnp.tanh(jnp.dot(x_ref[...], w1_ref[...],
                          preferred_element_type=jnp.float32)
                  + b1_ref[...])                                     # (M, 2H) f32

    # ---- per-head Linear(H,1) + tanh (masked weight rows, no slicing) --------
    ru = jnp.sum(h1 * w2u_ref[...], axis=-1, keepdims=True)          # (M, 1)
    ri = jnp.sum(h1 * w2i_ref[...], axis=-1, keepdims=True)          # (M, 1)
    tail = tail_ref[...]                                             # (1, 8)
    tu = jnp.tanh(ru + tail[:, 0:1])
    ti = jnp.tanh(ri + tail[:, 1:2])
    # Folded Linear(1,1) heads + hidden Linear(1,1):  logit == wh*(theta-beta)+bh
    logit = tu * tail[:, 2:3] + ti * tail[:, 3:4] + tail[:, 4:5]     # (M, 1)

    # ---- (M,1) column -> (TB,S) row-major tile via one tiny f32 MXU matmul ---
    spread = logit * sels_ref[...]                                   # (M, S)
    logits = jnp.dot(selt_ref[...], spread,
                     preferred_element_type=jnp.float32)             # (TB, S)

    # ---- softmax over the sequence axis ---------------------------------------
    m = jnp.max(logits, axis=-1, keepdims=True)
    e = jnp.exp(logits - m)
    inv = pl.reciprocal(jnp.sum(e, axis=-1, keepdims=True), approx=True)
    out_ref[...] = e * inv


def _pick_tb(B, S):
    """Batch-tile size: B itself when small, else a multiple of 8 dividing B,
    targeting ~256-1024 matmul rows (TB*S) per grid step so the per-step
    overhead is amortised and blocks satisfy the (8,128) rule."""
    if B <= 8 or B * S <= 256:
        return B
    best = None
    for cand in range(8, B + 1, 8):
        if B % cand == 0 and cand * S <= 1024:
            best = cand
    return best if best is not None else B


def deep_irt_forward(q, r, p):
    """q, r: int32 (B, S).  Returns (B, S) float32 softmax probabilities."""
    B, S = q.shape
    assert B > 1 and S > 1, "torch .squeeze() semantics assume B > 1 and S > 1"
    E = p["user_tab"].shape[1]
    H = p["w1u"].shape[1]
    TB = _pick_tb(B, S)
    assert B % TB == 0
    M = TB * S
    f32 = jnp.float32

    # ---- fused XLA gather of the embedding rows; bf16 feed for the MXU -------
    eu = jnp.take(p["user_tab"], q, axis=0)                         # (B, S, E)
    ei = jnp.take(p["item_tab"], q + r, axis=0)                     # (B, S, E)
    x = jnp.concatenate([eu, ei], axis=-1).reshape(B * S, 2 * E).astype(jnp.bfloat16)

    # ---- block-diagonal first layer -------------------------------------------
    zE = jnp.zeros((E, H), f32)
    w1blk = jnp.concatenate(
        [jnp.concatenate([p["w1u"], zE], axis=1),
         jnp.concatenate([zE, p["w1i"]], axis=1)], axis=0).astype(jnp.bfloat16)  # (2E, 2H)
    b1cat = jnp.concatenate([p["b1u"], p["b1i"]]).reshape(1, 2 * H)               # (1, 2H)

    zH = jnp.zeros((H,), f32)
    w2u_row = jnp.concatenate([p["w2u"], zH]).reshape(1, 2 * H)
    w2i_row = jnp.concatenate([zH, p["w2i"]]).reshape(1, 2 * H)

    # ---- tail folded to 5 scalars (exact, f32) --------------------------------
    au = p["wh"] * p["w3u"]
    ai = -p["wh"] * p["w3i"]
    c = p["wh"] * (p["b3u"] - p["b3i"]) + p["bh"]
    tail = jnp.concatenate([p["b2u"], p["b2i"], au, ai, c,
                            jnp.zeros((3,), f32)]).reshape(1, 8)

    # ---- host-built 0/1 selectors for the in-kernel (M,1)->(TB,S) "reshape" ---
    # (built with numpy; they are compile-time constants of size O(TB*M + M*S))
    ms = np.arange(M)
    sel_s = jnp.asarray(ms[:, None] % S == np.arange(S)[None, :], dtype=f32)     # (M, S)
    sel_t = jnp.asarray(ms[None, :] // S == np.arange(TB)[:, None], dtype=f32)   # (TB, M)

    out = pl.pallas_call(
        dirt_kernel,
        out_shape=jax.ShapeDtypeStruct((B, S), jnp.float32),
        grid=(B // TB,),
        in_specs=[
            pl.BlockSpec((M, 2 * E), lambda i: (i, 0)),       # activations (pipelined)
            pl.BlockSpec((2 * E, 2 * H), lambda i: (0, 0)),   # weights (resident)
            pl.BlockSpec((1, 2 * H), lambda i: (0, 0)),
            pl.BlockSpec((1, 2 * H), lambda i: (0, 0)),
            pl.BlockSpec((1, 2 * H), lambda i: (0, 0)),
            pl.BlockSpec((1, 8), lambda i: (0, 0)),
            pl.BlockSpec((TB, M), lambda i: (0, 0)),
            pl.BlockSpec((M, S), lambda i: (0, 0)),
        ],
        out_specs=pl.BlockSpec((TB, S), lambda i: (i, 0)),
        compiler_params=pltpu.CompilerParams(
            dimension_semantics=("parallel",),    # batch-tile axis: megacore-shardable
            vmem_limit_bytes=32 * 1024 * 1024,    # explicit; safe on v5e/v6e/v7x
        ),
    )(x, w1blk, b1cat, w2u_row, w2i_row, tail, sel_t, sel_s)
    return out


def deep_irt_ref(q, r, p):
    """Pure-JAX (f32) reference of the PyTorch forward pass."""
    eu = p["user_tab"][q]
    ei = p["item_tab"][q + r]

    def head(x, w1, b1, w2, b2, w3, b3):
        h1 = jnp.tanh(x @ w1 + b1)                 # (B, S, H)
        t2 = jnp.tanh(h1 @ w2[:, None] + b2)       # (B, S, 1)
        return t2 * w3 + b3                        # (B, S, 1)

    theta = head(eu, p["w1u"], p["b1u"], p["w2u"], p["b2u"], p["w3u"], p["b3u"])
    beta = head(ei, p["w1i"], p["b1i"], p["w2i"], p["b2i"], p["w3i"], p["b3i"])
    h = (theta - beta) * p["wh"] + p["bh"]         # (B, S, 1)
    return jax.nn.softmax(jnp.squeeze(h, -1), axis=1)


def init_params(key, num_q, num_u, emb_size, hidden_size):
    ks = jax.random.split(key, 9)

    def lin(k, fan_in, shape_w, shape_b):
        bound = 1.0 / np.sqrt(fan_in)
        kw, kb = jax.random.split(k)
        return (jax.random.uniform(kw, shape_w, jnp.float32, -bound, bound),
                jax.random.uniform(kb, shape_b, jnp.float32, -bound, bound))

    p = {}
    p["user_tab"] = jax.random.normal(ks[0], (num_q * num_u, emb_size), jnp.float32)
    p["item_tab"] = jax.random.normal(ks[1], (2 * num_q, emb_size), jnp.float32)
    p["w1u"], p["b1u"] = lin(ks[2], emb_size, (emb_size, hidden_size), (hidden_size,))
    p["w2u"], p["b2u"] = lin(ks[3], hidden_size, (hidden_size,), (1,))
    p["w3u"], p["b3u"] = lin(ks[4], 1, (1,), (1,))
    p["w1i"], p["b1i"] = lin(ks[5], emb_size, (emb_size, hidden_size), (hidden_size,))
    p["w2i"], p["b2i"] = lin(ks[6], hidden_size, (hidden_size,), (1,))
    p["w3i"], p["b3i"] = lin(ks[7], 1, (1,), (1,))
    p["wh"], p["bh"] = lin(ks[8], 1, (1,), (1,))
    return p


if __name__ == "__main__":
    num_q, num_u = 16, 4
    emb_size, hidden_size = 32, 32
    B, S = 2, 8

    key = jax.random.PRNGKey(0)
    kp, kq, kr = jax.random.split(key, 3)
    params = init_params(kp, num_q, num_u, emb_size, hidden_size)

    q = jax.random.randint(kq, (B, S), 0, num_q, dtype=jnp.int32)
    r = jax.random.randint(kr, (B, S), 0, 2, dtype=jnp.int32)

    out = jax.jit(deep_irt_forward)(q, r, params)
    out = jax.block_until_ready(out)

    ref = deep_irt_ref(q, r, params)
    # bf16 first layer + approx softmax reciprocal introduce small, bounded drift.
    np.testing.assert_allclose(np.asarray(out), np.asarray(ref), rtol=2e-2, atol=5e-3)

    print("KERNEL_OK")
</pallas_src>

<mosaic_0001>
module attributes {stable_mosaic.version = 11 : i64} {
  func.func @dirt_kernel(%arg0: i32, %arg1: memref<16x64xbf16, #tpu.memory_space<vmem>>, %arg2: memref<64x64xbf16, #tpu.memory_space<vmem>>, %arg3: memref<1x64xf32, #tpu.memory_space<vmem>>, %arg4: memref<1x64xf32, #tpu.memory_space<vmem>>, %arg5: memref<1x64xf32, #tpu.memory_space<vmem>>, %arg6: memref<1x8xf32, #tpu.memory_space<vmem>>, %arg7: memref<2x16xf32, #tpu.memory_space<vmem>>, %arg8: memref<16x8xf32, #tpu.memory_space<vmem>>, %arg9: memref<2x8xf32, #tpu.memory_space<vmem>>) attributes {dimension_semantics = [#tpu.dimension_semantics<parallel>], iteration_bounds = array<i64: 1>, scalar_prefetch = 0 : i64, scratch_operands = 0 : i64, tpu.core_type = #tpu.core_type<tc>, window_params = [{transform_indices = @transform_0, window_bounds = array<i64: 16, 64>}, {pipeline_mode = #tpu.pipeline_mode<synchronous>, transform_indices = @transform_1, window_bounds = array<i64: 64, 64>}, {pipeline_mode = #tpu.pipeline_mode<synchronous>, transform_indices = @transform_2, window_bounds = array<i64: 1, 64>}, {pipeline_mode = #tpu.pipeline_mode<synchronous>, transform_indices = @transform_3, window_bounds = array<i64: 1, 64>}, {pipeline_mode = #tpu.pipeline_mode<synchronous>, transform_indices = @transform_4, window_bounds = array<i64: 1, 64>}, {pipeline_mode = #tpu.pipeline_mode<synchronous>, transform_indices = @transform_5, window_bounds = array<i64: 1, 8>}, {pipeline_mode = #tpu.pipeline_mode<synchronous>, transform_indices = @transform_6, window_bounds = array<i64: 2, 16>}, {pipeline_mode = #tpu.pipeline_mode<synchronous>, transform_indices = @transform_7, window_bounds = array<i64: 16, 8>}, {transform_indices = @transform_8, window_bounds = array<i64: 2, 8>}]} {
    %c0 = arith.constant 0 : index
    %c0_0 = arith.constant 0 : index
    %0 = vector.load %arg1[%c0, %c0_0] : memref<16x64xbf16, #tpu.memory_space<vmem>>, vector<16x64xbf16>
    %c0_1 = arith.constant 0 : index
    %c0_2 = arith.constant 0 : index
    %1 = vector.load %arg2[%c0_1, %c0_2] : memref<64x64xbf16, #tpu.memory_space<vmem>>, vector<64x64xbf16>
    %cst = arith.constant dense<0.000000e+00> : vector<16x64xf32>
    %2 = tpu.matmul %0, %1, %cst {dimension_numbers = #tpu.dot_dimension_numbers<[1], [0], [0], [1], [0, 0, 1, 1], [], []>} : vector<16x64xbf16>, vector<64x64xbf16>, vector<16x64xf32> -> vector<16x64xf32>
    %c0_3 = arith.constant 0 : index
    %c0_4 = arith.constant 0 : index
    %3 = vector.load %arg3[%c0_3, %c0_4] : memref<1x64xf32, #tpu.memory_space<vmem>>, vector<1x64xf32>
    %4 = vector.broadcast %3 : vector<1x64xf32> to vector<16x64xf32>
    %5 = arith.addf %2, %4 : vector<16x64xf32>
    %6 = math.tanh %5 : vector<16x64xf32>
    %c0_5 = arith.constant 0 : index
    %c0_6 = arith.constant 0 : index
    %7 = vector.load %arg4[%c0_5, %c0_6] : memref<1x64xf32, #tpu.memory_space<vmem>>, vector<1x64xf32>
    %8 = vector.broadcast %7 : vector<1x64xf32> to vector<16x64xf32>
    %9 = arith.mulf %6, %8 : vector<16x64xf32>
    %cst_7 = arith.constant dense<0.000000e+00> : vector<16xf32>
    %10 = vector.multi_reduction <add>, %9, %cst_7 [1] : vector<16x64xf32> to vector<16xf32>
    %11 = vector.shape_cast %10 : vector<16xf32> to vector<16x1xf32>
    %c0_8 = arith.constant 0 : index
    %c0_9 = arith.constant 0 : index
    %12 = vector.load %arg5[%c0_8, %c0_9] : memref<1x64xf32, #tpu.memory_space<vmem>>, vector<1x64xf32>
    %13 = vector.broadcast %12 : vector<1x64xf32> to vector<16x64xf32>
    %14 = arith.mulf %6, %13 : vector<16x64xf32>
    %cst_10 = arith.constant dense<0.000000e+00> : vector<16xf32>
    %15 = vector.multi_reduction <add>, %14, %cst_10 [1] : vector<16x64xf32> to vector<16xf32>
    %16 = vector.shape_cast %15 : vector<16xf32> to vector<16x1xf32>
    %c0_11 = arith.constant 0 : index
    %c0_12 = arith.constant 0 : index
    %17 = vector.load %arg6[%c0_11, %c0_12] : memref<1x8xf32, #tpu.memory_space<vmem>>, vector<1x8xf32>
    %18 = vector.extract_strided_slice %17 {offsets = [0, 0], sizes = [1, 1], strides = [1, 1]} : vector<1x8xf32> to vector<1x1xf32>
    %19 = vector.broadcast %18 : vector<1x1xf32> to vector<16x1xf32>
    %20 = arith.addf %11, %19 : vector<16x1xf32>
    %21 = math.tanh %20 : vector<16x1xf32>
    %22 = vector.extract_strided_slice %17 {offsets = [0, 1], sizes = [1, 1], strides = [1, 1]} : vector<1x8xf32> to vector<1x1xf32>
    %23 = vector.broadcast %22 : vector<1x1xf32> to vector<16x1xf32>
    %24 = arith.addf %16, %23 : vector<16x1xf32>
    %25 = math.tanh %24 : vector<16x1xf32>
    %26 = vector.extract_strided_slice %17 {offsets = [0, 2], sizes = [1, 1], strides = [1, 1]} : vector<1x8xf32> to vector<1x1xf32>
    %27 = vector.broadcast %26 : vector<1x1xf32> to vector<16x1xf32>
    %28 = arith.mulf %21, %27 : vector<16x1xf32>
    %29 = vector.extract_strided_slice %17 {offsets = [0, 3], sizes = [1, 1], strides = [1, 1]} : vector<1x8xf32> to vector<1x1xf32>
    %30 = vector.broadcast %29 : vector<1x1xf32> to vector<16x1xf32>
    %31 = arith.mulf %25, %30 : vector<16x1xf32>
    %32 = arith.addf %28, %31 : vector<16x1xf32>
    %33 = vector.extract_strided_slice %17 {offsets = [0, 4], sizes = [1, 1], strides = [1, 1]} : vector<1x8xf32> to vector<1x1xf32>
    %34 = vector.broadcast %33 : vector<1x1xf32> to vector<16x1xf32>
    %35 = arith.addf %32, %34 : vector<16x1xf32>
    %c0_13 = arith.constant 0 : index
    %c0_14 = arith.constant 0 : index
    %36 = vector.load %arg8[%c0_13, %c0_14] : memref<16x8xf32, #tpu.memory_space<vmem>>, vector<16x8xf32>
    %37 = vector.broadcast %35 : vector<16x1xf32> to vector<16x8xf32>
    %38 = arith.mulf %37, %36 : vector<16x8xf32>
    %c0_15 = arith.constant 0 : index
    %c0_16 = arith.constant 0 : index
    %39 = vector.load %arg7[%c0_15, %c0_16] : memref<2x16xf32, #tpu.memory_space<vmem>>, vector<2x16xf32>
    %cst_17 = arith.constant dense<0.000000e+00> : vector<2x8xf32>
    %40 = tpu.matmul %39, %38, %cst_17 {dimension_numbers = #tpu.dot_dimension_numbers<[1], [0], [0], [1], [0, 0, 1, 1], [], []>} : vector<2x16xf32>, vector<16x8xf32>, vector<2x8xf32> -> vector<2x8xf32>
    %cst_18 = arith.constant dense<0xFF800000> : vector<2xf32>
    %41 = vector.multi_reduction <maximumf>, %40, %cst_18 [1] : vector<2x8xf32> to vector<2xf32>
    %42 = vector.shape_cast %41 : vector<2xf32> to vector<2x1xf32>
    %43 = vector.broadcast %42 : vector<2x1xf32> to vector<2x8xf32>
    %44 = arith.subf %40, %43 : vector<2x8xf32>
    %45 = math.exp %44 : vector<2x8xf32>
    %cst_19 = arith.constant dense<0.000000e+00> : vector<2xf32>
    %46 = vector.multi_reduction <add>, %45, %cst_19 [1] : vector<2x8xf32> to vector<2xf32>
    %47 = vector.shape_cast %46 : vector<2xf32> to vector<2x1xf32>
    %48 = tpu.reciprocal %47 {approx = true} : vector<2x1xf32> -> vector<2x1xf32>
    %49 = vector.broadcast %48 : vector<2x1xf32> to vector<2x8xf32>
    %50 = arith.mulf %45, %49 : vector<2x8xf32>
    %c0_20 = arith.constant 0 : index
    %c0_21 = arith.constant 0 : index
    %51 = vector.load %arg9[%c0_20, %c0_21] : memref<2x8xf32, #tpu.memory_space<vmem>>, vector<2x8xf32>
    tpu.vector_store %arg9[%c0_20, %c0_21], %50 {strides = array<i32>} : memref<2x8xf32, #tpu.memory_space<vmem>>, vector<2x8xf32>,
    return
  }
  func.func @transform_0(%arg0: i32) -> (i32, i32) {
    %c0_i32 = arith.constant 0 : i32
    %c0_i32_0 = arith.constant 0 : i32
    return %arg0, %c0_i32 : i32, i32
  }
  func.func @transform_1(%arg0: i32) -> (i32, i32) {
    %c0_i32 = arith.constant 0 : i32
    %c0_i32_0 = arith.constant 0 : i32
    %c0_i32_1 = arith.constant 0 : i32
    return %c0_i32, %c0_i32_0 : i32, i32
  }
  func.func @transform_2(%arg0: i32) -> (i32, i32) {
    %c0_i32 = arith.constant 0 : i32
    %c0_i32_0 = arith.constant 0 : i32
    %c0_i32_1 = arith.constant 0 : i32
    return %c0_i32, %c0_i32_0 : i32, i32
  }
  func.func @transform_3(%arg0: i32) -> (i32, i32) {
    %c0_i32 = arith.constant 0 : i32
    %c0_i32_0 = arith.constant 0 : i32
    %c0_i32_1 = arith.constant 0 : i32
    return %c0_i32, %c0_i32_0 : i32, i32
  }
  func.func @transform_4(%arg0: i32) -> (i32, i32) {
    %c0_i32 = arith.constant 0 : i32
    %c0_i32_0 = arith.constant 0 : i32
    %c0_i32_1 = arith.constant 0 : i32
    return %c0_i32, %c0_i32_0 : i32, i32
  }
  func.func @transform_5(%arg0: i32) -> (i32, i32) {
    %c0_i32 = arith.constant 0 : i32
    %c0_i32_0 = arith.constant 0 : i32
    %c0_i32_1 = arith.constant 0 : i32
    return %c0_i32, %c0_i32_0 : i32, i32
  }
  func.func @transform_6(%arg0: i32) -> (i32, i32) {
    %c0_i32 = arith.constant 0 : i32
    %c0_i32_0 = arith.constant 0 : i32
    %c0_i32_1 = arith.constant 0 : i32
    return %c0_i32, %c0_i32_0 : i32, i32
  }
  func.func @transform_7(%arg0: i32) -> (i32, i32) {
    %c0_i32 = arith.constant 0 : i32
    %c0_i32_0 = arith.constant 0 : i32
    %c0_i32_1 = arith.constant 0 : i32
    return %c0_i32, %c0_i32_0 : i32, i32
  }
  func.func @transform_8(%arg0: i32) -> (i32, i32) {
    %c0_i32 = arith.constant 0 : i32
    %c0_i32_0 = arith.constant 0 : i32
    return %arg0, %c0_i32 : i32, i32
  }
}

</mosaic_0001>

<bundles_post_ra>
// kernel: deep_irt_forward.1
= control target key start
LH: loop header
LB: loop body
LE: loop exit
PB: predicated region body
PF: predicated region fallthrough
CT: control target
= control target key end

     0   :  { %v403_v1 = vmov 0.0   ;;  %vm404_vm0 = vmmov 0   ;;  %s512_s0 = inlined_call_operand.vmem [shape: bf16[16,64], index: 0, kind: input, shape index: {}]   ;;  %s513_s1 = inlined_call_operand.vmem [shape: bf16[64,64], index: 1, kind: input, shape index: {}]   ;;  %s514_s2 = inlined_call_operand.vmem [shape: f32[1,64], index: 2, kind: input, shape index: {}]   ;;  %s515_s3 = inlined_call_operand.vmem [shape: f32[1,64], index: 3, kind: input, shape index: {}]   ;;  %s516_s4 = inlined_call_operand.vmem [shape: f32[1,64], index: 4, kind: input, shape index: {}]   ;;  %s517_s5 = inlined_call_operand.vmem [shape: f32[1,8], index: 5, kind: input, shape index: {}]   ;;  %s518_s6 = inlined_call_operand.vmem [shape: f32[2,16], index: 6, kind: input, shape index: {}]   ;;  %s519_s7 = inlined_call_operand.vmem [shape: f32[16,8], index: 7, kind: input, shape index: {}]   ;;  %s520_s8 = inlined_call_operand.hbm [shape: f32[2,8], index: 8, kind: output, shape index: {}]  }
   0x1   :  { %v358_v0 = vld [vmem:[%s513_s1] sm:$0xff]   ;;  %326 = vmatprep.subr.bf16.mxu0 %v403_v1  ;;  %v359_v2 = vld [vmem:[%s513_s1 + $0x8] sm:$0xff]   ;;  %334 = vmatprep.mubr.msk.bf16.mxu0 %vm404_vm0, %v403_v1 }
   0x2   :  { %327 = vmatpush3.bf16.msra.mxu0 %v358_v0  ;;  %342 = vmatprep.mubr.msk.f32.mxu1 %vm404_vm0, %v403_v1  ;;  %v316_v3 = vld [vmem:[%s517_s5] ss:$0 sm:$0xff] }
   0x3   :  { %328 = vmatprep.subr.bf16.mxu0 %v403_v1 }
   0x4   :  { %13 = vsyncpa [#allocation3], 0  ;;  %v360_v4 = vld [vmem:[%s513_s1 + $0x10] sm:$0xff]   ;;  %s405_s13 = smov 126   ;;  %v361_v5 = vld [vmem:[%s513_s1 + $0x18] sm:$0xff]   ;;  %vm77_vm1 = vcmask 523264  }
   0x5   :  { %169 = vrot.lane.b32.xlu1 %v316_v3, %s405_s13  ;;  %v362_v6 = vld [vmem:[%s512_s0] sm:$0xff]   ;;  %v406_v30 = vmov 0   ;;  %v409_v51 = vmov 0.0|0.0   ;;  %v192_v52 = vld [vmem:[%s519_s7 + $0x8] sm:$0xff]  ;;  %vm206_vm2 = vcmask 130048   ;;  %vm280_vm3 = vcmask 58368  }
   0x6   :  { %329 = vmatpush3.bf16.msra.mxu0 %v359_v2  ;;  %v307_v7 = vld [vmem:[%s514_s2] ss:$0 sm:$0xff]  ;;  %357 = vset.pattern.permute.xlu0 %v406_v30  ;;  %s407_s2 = smov 127  }
   0x7   :  { %330 = vmatprep.subr.bf16.mxu0 %v403_v1  ;;  %v315_v14 = vld [vmem:[%s516_s4] ss:$0 sm:$0xff]  ;;  %356 = vset.pattern.permute.xlu1 %v406_v30 }
   0x8   :  { %v314_v15 = vld [vmem:[%s515_s3] ss:$0 sm:$0xff]  ;;  %s408_s3 = smov 124   ;;  %345 = vmatprep.subr.bf16.mxu1 %v409_v51 }
   0x9   :  { %v191_v53 = vld [vmem:[%s519_s7] sm:$0xff]  ;;  %s410_s7 = smov [#allocation2]  }
   0xa   :  { %331 = vmatpush3.bf16.msra.mxu0 %v360_v4  ;;  %v205_v59 = vld [vmem:[%s518_s6] sm:$0x3]  ;;  %s299_s6 = sshll.u32 %s410_s7, 4  ;;  %s300_s6 = int_to_ptr.vmem [resolvable:$true] %s299_s6 }
   0xb   :  { %332 = vmatprep.subr.bf16.mxu0 %v403_v1  ;;  %s379_s26 = scalar_lea.vmem %s300_s6, 32  ;;  %p384_p1 = scmp.lt.s32.totalorder %s300_s6, %s300_s6 }
   0xc   :  { %p380_p0 = scmp.ne.s32.totalorder %s300_s6, %s379_s26  ;;  %p385_p2 = scmp.lt.s32.totalorder %s379_s26, %s379_s26 }
   0xe   :  { %333 = vmatpush3.bf16.msra.mxu0 %v361_v5  ;;  %p386_p3 = por %p385_p2, %p384_p1 }
  0x10   :  { %p387_p4 = pnand %p386_p3, %p380_p0 }
  0x11   :  { %335 = vmatmul.mubr.msk.bf16.vlgmr.msra.gmra.mrb[0].mxu0 %vm77_vm1, %v362_v6 }
  0x77   :  { %v170_v32 = vpop.permute.xlu1 %169 }
  0xe4   :  { %v115_v8 = vpop.f32.mrb[0].mxu0 }
  0xe5   :  { %v116_v9 = vadd.f32 %v307_v7, %v115_v8  ;;  %v336_v10 = vpop.f32.mrb[1].mxu0 }
  0xe6   :  { %v118_v11 = vpop.f32.mrb[2].mxu0 }
  0xe7   :  { %363 = vtanh.f32 %v116_v9  ;;  %v119_v12 = vadd.f32 %v307_v7, %v118_v11  ;;  %v337_v13 = vpop.f32.mrb[3].mxu0 }
  0xe9   :  { %365 = vtanh.f32 %v119_v12 }
  0xf1   :  { %v364_v16 = vpop.eup %363 }
  0xf2   :  { %v146_v17 = vmul.f32 %v364_v16, %v315_v14  ;;  %v131_v18 = vmul.f32 %v364_v16, %v314_v15 }
  0xf3   :  { %v366_v19 = vpop.eup %365 }
  0xf4   :  { %v148_v20 = vsel %vm77_vm1, %v146_v17, 0.0  ;;  %v133_v21 = vsel %vm77_vm1, %v131_v18, 0.0  ;;  %v147_v22 = vmul.f32 %v366_v19, %v315_v14  ;;  %v132_v24 = vmul.f32 %v366_v19, %v314_v15 }
  0xf5   :  { %149 = vadd.xlane.f32.xlu0 %v148_v20  ;;  %134 = vadd.xlane.f32.xlu1 %v133_v21 }
  0xf6   :  { %v151_v23 = vsel %vm77_vm1, %v147_v22, 0.0  ;;  %v136_v25 = vsel %vm77_vm1, %v132_v24, 0.0 }
  0xf9   :  { %152 = vadd.xlane.f32.xlu0 %v151_v23 }
  0xfd   :  { %137 = vadd.xlane.f32.xlu0 %v136_v25 }
 0x182   :  { %v150_v26 = vpop.xlane.xlu0 %149  ;;  %v135_v36 = vpop.xlane.xlu1 %134 }
 0x183   :  { %v165_v27 = vadd.f32 %v316_v3, %v150_v26  ;;  %v161_v38 = vadd.f32 %v316_v3, %v135_v36 }
 0x185   :  { %367 = vtanh.f32 %v165_v27 }
 0x186   :  { %v153_v28 = vpop.xlane.xlu0 %152 }
 0x187   :  { %v166_v29 = vadd.f32 %v316_v3, %v153_v28 }
 0x189   :  { %369 = vtanh.f32 %v166_v29 }
 0x18a   :  { %v138_v37 = vpop.xlane.xlu0 %137  ;;  %371 = vtanh.f32 %v161_v38 }
 0x18b   :  { %v162_v39 = vadd.f32 %v316_v3, %v138_v37 }
 0x18d   :  { %373 = vtanh.f32 %v162_v39 }
 0x18f   :  { %v368_v31 = vpop.eup %367 }
 0x190   :  { %v174_v33 = vmul.f32 %v368_v31, %v170_v32 }
 0x192   :  { %178 = vrot.lane.b32.xlu0 %v174_v33, %s407_s2 }
 0x193   :  { %v370_v34 = vpop.eup %369 }
 0x194   :  { %v175_v35 = vmul.f32 %v370_v34, %v170_v32  ;;  %v372_v41 = vpop.eup %371 }
 0x195   :  { %v172_v44 = vmul.f32 %v372_v41, %v170_v32 }
 0x196   :  { %180 = vrot.lane.b32.xlu0 %v175_v35, %s407_s2 }
 0x197   :  { %v374_v42 = vpop.eup %373 }
 0x198   :  { %v173_v45 = vmul.f32 %v374_v42, %v170_v32 }
 0x19a   :  { %186 = vrot.lane.b32.xlu0 %v316_v3, %s408_s3 }
 0x204   :  { %v179_v40 = vpop.permute.xlu0 %178 }
 0x205   :  { %v184_v46 = vadd.f32 %v179_v40, %v172_v44 }
 0x208   :  { %v181_v43 = vpop.permute.xlu0 %180 }
 0x209   :  { %v185_v47 = vadd.f32 %v181_v43, %v173_v45 }
 0x20c   :  { %v187_v48 = vpop.permute.xlu0 %186 }
 0x20d   :  { %v189_v49 = vadd.f32 %v187_v48, %v184_v46  ;;  %v190_v50 = vadd.f32 %v187_v48, %v185_v47 }
 0x20f   :  { %200 = vperm.xlu0 %357, %v190_v50   ;;  %195 = vperm.xlu1 %356, %v189_v49  }
 0x28e   :  { %v201_v54 = vpop.permute.xlu0 %200  ;;  %v196_v55 = vpop.permute.xlu1 %195 }
 0x28f   :  { %v204_v56 = vmul.f32 %v201_v54, %v192_v52  ;;  %v203_v57 = vmul.f32 %v196_v55, %v191_v53 }
 0x291   :  { %v346_v58 = vpack.c.bf16 %v204_v56, %v203_v57 }
 0x293   :  { %347 = vmatpush3.bf16.msra.mxu1 %v346_v58 }
 0x296   :  { %343 = vmatmul.mubr.msk.f32.vlgmr.msra.gmra.mrb[0].mxu1 %vm206_vm2, %v205_v59 }
 0x369   :  { %v276_v60 = vpop.f32.mrb[0].mxu1 }
 0x36a   :  { %v344_v61 = vpop.f32.mrb[1].mxu1  ;;  %v281_v62 = vsel %vm280_vm3, %v276_v60, -inf }
 0x36b   :  { %282 = vmax.xlane.f32.xlu0 %v281_v62 }
 0x3f8   :  { %v283_v63 = vpop.xlane.xlu0 %282 }
 0x3f9   :  { %v284_v0 = vsub.f32 %v276_v60, %v283_v63 }
 0x3fb   :  { %v285_v1 = vmul.f32 1.442695, %v284_v0 }
 0x3fd   :  { %375 = vpow2.f32 %v285_v1 }
 0x407   :  { %v376_v2 = vpop.eup %375 }
 0x408   :  { %v287_v3 = vsel %vm280_vm3, %v376_v2, 0.0 }
 0x409   :  { %288 = vadd.xlane.f32.xlu1 %v287_v3 }
 0x496   :  { %v289_v4 = vpop.xlane.xlu1 %288 }
 0x497   :  { %377 = vrcp.f32 %v289_v4 }
 0x4a1   :  { %v378_v5 = vpop.eup %377 }
 0x4a2   :  { %v291_v6 = vmul.f32 %v378_v5, %v376_v2 }
 0x4a4   :  { %292 = vst.msk [vmem:[#allocation2] sm:$0x3] %vm280_vm3, %v291_v6 }
 0x4a5   :  { %390 = shalt.err (!%p387_p4)
}
 0x4a6   :  { %s391_s29 = scalar_lea.hbm %s520_s8, 32 }
 0x4a7   :  { %p392_p5 = scmp.ne.s32.totalorder %s520_s8, %s391_s29  ;;  %p395_p6 = scmp.lt.u32.totalorder %s391_s29, %s520_s8 }
 0x4a9   :  { %p397_p7 = pnand %p395_p6, %p392_p5 }
 0x4ab   :  { %400 = shalt.err (!%p397_p7)
}
 0x4ac   :  { %302 = dma.vmem_to_hbm [thread:$0]  %s300_s6, 32, %s520_s8, [#allocation3]  }
 0x4ad   :  { %401 = dma.done.wait [#allocation3], 32  }
 0x4ae   :  { %402 = vsyncadd [#allocation3], 4294967264 }
 0x4af   :  { %306 = vsyncpa [#allocation3], 1 }

</bundles_post_ra>
